<compile_context>
chip_gen: v5e
topology: v5e:2x2
jax: 0.10.0
libtpu: 0.0.40
codegen_flags: <defaults>
</compile_context>

<pallas_src>
import functools

import jax
import jax.numpy as jnp
from jax.experimental import pallas as pl
from jax.experimental.pallas import tpu as pltpu


# --------------------------------------------------------------------------
# Kernel 1: grouped conv (per-group im2col matmuls) + bias + relu
#           + split-sum global average pool (masked for HW padding)
# --------------------------------------------------------------------------
def _conv_gap_kernel(x_ref, w_ref, cb_ref, y_ref, gap_ref, *,
                     channels, radix, groups, inv_hw, hw_valid, tile_hw,
                     need_mask):
    t = pl.program_id(1)

    # per-group MXU matmuls: (Cout_g, K_g) @ (K_g, tile_hw) -> f32
    parts = []
    for g in range(groups):
        parts.append(jnp.dot(w_ref[g], x_ref[0, g],
                             preferred_element_type=jnp.float32))
    acc = parts[0] if groups == 1 else jnp.concatenate(parts, axis=0)

    y = jnp.maximum(acc + cb_ref[...], 0.0)          # f32 relu(conv + bias)
    y_ref[0] = y.astype(y_ref.dtype)                 # lane-dense (bf16) store

    # split-sum over radix splits (on the f32 value, before the bf16 cast)
    ssum = y[0:channels, :]
    for r in range(1, radix):
        ssum = ssum + y[r * channels:(r + 1) * channels, :]

    if need_mask:
        # padded spatial columns hold relu(bias) != 0 -> mask them out of GAP
        col = jax.lax.broadcasted_iota(jnp.int32, ssum.shape, 1) + t * tile_hw
        ssum = jnp.where(col < hw_valid, ssum, 0.0)

    # GAP accumulator: output block is revisited across the tile axis
    @pl.when(t == 0)
    def _init():
        gap_ref[...] = jnp.zeros_like(gap_ref)

    gap_ref[...] += (jnp.sum(ssum, axis=-1, keepdims=True) * inv_hw)[None]


# --------------------------------------------------------------------------
# Kernel 2: attention MLP + rSoftMax (once per batch, under pl.when) fused
#           with the attention-weighted sum of the radix splits
# --------------------------------------------------------------------------
def _attn_apply_kernel(gap_ref, f1w_ref, f1b_ref, f2w_ref, f2b_ref,
                       y_ref, o_ref, att_scr, *, channels, radix, cardinality):
    t = pl.program_id(1)

    @pl.when(t == 0)
    def _attention():
        gap = gap_ref[0]                                           # (channels, 1)
        h = jnp.maximum(
            jnp.dot(f1w_ref[...], gap, preferred_element_type=jnp.float32)
            + f1b_ref[...], 0.0)                                   # (inter, 1)
        logits = (jnp.dot(f2w_ref[...], h, preferred_element_type=jnp.float32)
                  + f2b_ref[...])                                  # (Cout, 1)

        if radix > 1:
            cpc = channels // cardinality
            rows = []
            for r in range(radix):
                ps = [logits[g * radix * cpc + r * cpc:
                             g * radix * cpc + (r + 1) * cpc, :]
                      for g in range(cardinality)]
                rows.append(ps[0] if cardinality == 1
                            else jnp.concatenate(ps, axis=0))      # (channels, 1)
            m = rows[0]
            for r in range(1, radix):
                m = jnp.maximum(m, rows[r])
            exps = [jnp.exp(row - m) for row in rows]
            denom = exps[0]
            for r in range(1, radix):
                denom = denom + exps[r]
            att = jnp.concatenate([e / denom for e in exps], axis=0)  # (Cout, 1)
        else:
            att = 1.0 / (1.0 + jnp.exp(-logits))                      # sigmoid
        att_scr[...] = att

    att = att_scr[...]                                # (Cout, 1), f32
    yv = y_ref[0].astype(jnp.float32)                 # (Cout, tile), bf16 -> f32
    out = att[0:channels, :] * yv[0:channels, :]
    for r in range(1, radix):
        out = out + (att[r * channels:(r + 1) * channels, :]
                     * yv[r * channels:(r + 1) * channels, :])
    o_ref[0] = out


# --------------------------------------------------------------------------
# VMEM-aware tiling helpers
# --------------------------------------------------------------------------
def _vmem_capacity_bytes():
    try:
        cap = int(pltpu.get_tpu_info().vmem_capacity_bytes)
        if cap > 0:
            return cap
    except Exception:
        pass
    return 64 * 1024 * 1024        # conservative fallback (v7x per-TC VMEM)


def _pick_hw_tile(hw_pad, groups, k_g, cout, x_bytes, y_bytes, budget_bytes):
    """Largest 128-multiple divisor of hw_pad whose double-buffered kernel-1
    working set fits the VMEM budget, preferring >=2 grid steps and a soft
    2048-lane cap (roofline knee is 512-1024)."""
    fixed = cout * k_g * x_bytes + cout * 4 + (2 << 20)    # weights + bias + margin

    def per_step(t):
        return (2 * groups * k_g * t * x_bytes             # xcol tile, dbl-buffered
                + 2 * cout * t * y_bytes)                  # y tile, dbl-buffered

    m = hw_pad // 128
    divisors = [d * 128 for d in range(1, m + 1) if m % d == 0]
    fitting = [t for t in divisors if fixed + per_step(t) <= budget_bytes]
    if not fitting:
        return 128
    multi = [t for t in fitting if hw_pad // t >= 2]
    cand = multi if multi else fitting
    soft = [t for t in cand if t <= 2048]
    return max(soft) if soft else min(cand)


# --------------------------------------------------------------------------
# Wrapper (layout plumbing only)
# --------------------------------------------------------------------------
def splat_conv2d(x_nchw, conv_w, conv_b, fc1_w, fc1_b, fc2_w, fc2_b, *,
                 radix, cardinality, channels, padding, kernel_size,
                 mxu_dtype=jnp.bfloat16):
    B, Cin, H_in, W_in = x_nchw.shape
    KH = KW = kernel_size
    G = cardinality * radix
    Cout = channels * radix
    cout_g = Cout // G
    cin_g = Cin // G
    K_g = cin_g * KH * KW
    H = H_in + 2 * padding - (KH - 1)            # stride=1, dilation=1
    W = W_in + 2 * padding - (KW - 1)
    HW = H * W
    hw_pad = ((HW + 127) // 128) * 128           # lane-dense spatial extent
    need_mask = hw_pad != HW
    inter = fc1_w.shape[0]

    x_bytes = jnp.dtype(mxu_dtype).itemsize
    y_dtype = mxu_dtype                          # bf16 y on the perf path
    y_bytes = jnp.dtype(y_dtype).itemsize

    # generation-aware VMEM budget (v7x: 64 MiB -> 48 MiB limit; v5e/v6e: 96 MiB)
    cap = _vmem_capacity_bytes()
    vmem_limit = min((cap * 3) // 4, 96 * 1024 * 1024)
    budget = vmem_limit - (4 << 20)
    tile_hw = _pick_hw_tile(hw_pad, G, K_g, Cout, x_bytes, y_bytes, budget)
    n_tiles = hw_pad // tile_hw

    # ---------- im2col with no wrapper transposes ----------
    # pad NCHW, slice the KH*KW taps, stack after Cin, reshape (contiguous
    # splits only) to (B, G, K_g, HW); K order per group = (cin_g, kh, kw),
    # which is exactly the natural OIHW flattening of the grouped weight.
    x_pad = jnp.pad(x_nchw.astype(mxu_dtype),
                    ((0, 0), (0, 0), (padding, padding), (padding, padding)))
    taps = [x_pad[:, :, kh:kh + H, kw:kw + W]
            for kh in range(KH) for kw in range(KW)]         # each (B, Cin, H, W)
    xcol = jnp.stack(taps, axis=2)                           # (B, Cin, KH*KW, H, W)
    xcol = xcol.reshape(B, G, K_g, HW)
    if need_mask:
        xcol = jnp.pad(xcol, ((0, 0), (0, 0), (0, 0), (0, hw_pad - HW)))

    # grouped conv weight: (Cout, Cin/G, KH, KW) -> (G, Cout_g, K_g), no transpose
    w3 = conv_w.reshape(G, cout_g, K_g).astype(mxu_dtype)
    cb = conv_b.reshape(Cout, 1).astype(jnp.float32)

    # grouped 1x1 fc weights in column form (out, in); tiny, kept f32
    def grouped_1x1_dense(wq, groups):
        out_c, in_g = wq.shape[0], wq.shape[1]
        in_c, out_g = in_g * groups, out_c // groups
        if groups == 1:
            return wq[:, :, 0, 0].astype(jnp.float32)
        d = jnp.zeros((out_c, in_c), jnp.float32)
        for g in range(groups):
            d = d.at[g * out_g:(g + 1) * out_g,
                     g * in_g:(g + 1) * in_g].set(wq[g * out_g:(g + 1) * out_g, :, 0, 0])
        return d

    f1w = grouped_1x1_dense(fc1_w, cardinality)              # (inter, channels)
    f2w = grouped_1x1_dense(fc2_w, cardinality)              # (Cout, inter)
    f1b = fc1_b.reshape(inter, 1).astype(jnp.float32)
    f2b = fc2_b.reshape(Cout, 1).astype(jnp.float32)

    # ---------- kernel 1: conv + bias + relu + split-sum GAP ----------
    conv_kernel = functools.partial(
        _conv_gap_kernel, channels=channels, radix=radix, groups=G,
        inv_hw=1.0 / HW, hw_valid=HW, tile_hw=tile_hw, need_mask=need_mask)
    conv_cost = pl.CostEstimate(
        flops=2 * B * hw_pad * Cout * K_g + 2 * B * Cout * hw_pad,
        transcendentals=0,
        bytes_accessed=(xcol.size * x_bytes + w3.size * x_bytes + Cout * 4
                        + B * Cout * hw_pad * y_bytes + B * channels * 4))
    y, gap = pl.pallas_call(
        conv_kernel,
        out_shape=(jax.ShapeDtypeStruct((B, Cout, hw_pad), y_dtype),
                   jax.ShapeDtypeStruct((B, channels, 1), jnp.float32)),
        grid=(B, n_tiles),
        in_specs=[
            pl.BlockSpec((1, G, K_g, tile_hw), lambda b, t: (b, 0, 0, t)),
            pl.BlockSpec((G, cout_g, K_g), lambda b, t: (0, 0, 0)),
            pl.BlockSpec((Cout, 1), lambda b, t: (0, 0)),
        ],
        out_specs=(
            pl.BlockSpec((1, Cout, tile_hw), lambda b, t: (b, 0, t)),
            pl.BlockSpec((1, channels, 1), lambda b, t: (b, 0, 0)),
        ),
        compiler_params=pltpu.CompilerParams(
            dimension_semantics=("parallel", "arbitrary"),
            vmem_limit_bytes=vmem_limit),
        cost_estimate=conv_cost,
    )(xcol, w3, cb)

    # ---------- kernel 2: fused attention MLP + rSoftMax + apply ----------
    apply_kernel = functools.partial(
        _attn_apply_kernel, channels=channels, radix=radix,
        cardinality=cardinality)
    apply_cost = pl.CostEstimate(
        flops=(2 * B * Cout * hw_pad
               + 2 * B * (inter * channels + Cout * inter)),
        transcendentals=B * Cout,
        bytes_accessed=(B * Cout * hw_pad * y_bytes
                        + B * channels * hw_pad * 4 + B * channels * 4
                        + (f1w.size + f2w.size + inter + Cout) * 4))
    out = pl.pallas_call(
        apply_kernel,
        out_shape=jax.ShapeDtypeStruct((B, channels, hw_pad), jnp.float32),
        grid=(B, n_tiles),
        in_specs=[
            pl.BlockSpec((1, channels, 1), lambda b, t: (b, 0, 0)),
            pl.BlockSpec((inter, channels), lambda b, t: (0, 0)),
            pl.BlockSpec((inter, 1), lambda b, t: (0, 0)),
            pl.BlockSpec((Cout, inter), lambda b, t: (0, 0)),
            pl.BlockSpec((Cout, 1), lambda b, t: (0, 0)),
            pl.BlockSpec((1, Cout, tile_hw), lambda b, t: (b, 0, t)),
        ],
        out_specs=pl.BlockSpec((1, channels, tile_hw), lambda b, t: (b, 0, t)),
        scratch_shapes=[pltpu.VMEM((Cout, 1), jnp.float32)],
        compiler_params=pltpu.CompilerParams(
            dimension_semantics=("parallel", "arbitrary"),
            vmem_limit_bytes=vmem_limit),
        cost_estimate=apply_cost,
    )(gap, f1w, f1b, f2w, f2b, y)

    if need_mask:
        out = out[:, :, :HW]
    return out.reshape(B, channels, H, W)                 # already NCHW


# --------------------------------------------------------------------------
# Pure-JAX reference matching the PyTorch module semantics (NCHW)
# --------------------------------------------------------------------------
def ref_forward(x, conv_w, conv_b, fc1_w, fc1_b, fc2_w, fc2_b, *,
                radix, cardinality, channels, padding):
    G = cardinality * radix
    y = jax.lax.conv_general_dilated(
        x, conv_w, window_strides=(1, 1),
        padding=((padding, padding), (padding, padding)),
        dimension_numbers=('NCHW', 'OIHW', 'NCHW'),
        feature_group_count=G,
        precision=jax.lax.Precision.HIGHEST)
    y = jnp.maximum(y + conv_b[None, :, None, None], 0.0)
    splits = [y[:, r * channels:(r + 1) * channels] for r in range(radix)]
    gap = sum(splits).mean(axis=(2, 3))

    def grouped_fc(z, w, b, groups):
        out_c, in_g = w.shape[0], w.shape[1]
        out_g = out_c // groups
        outs = [jnp.dot(z[:, g * in_g:(g + 1) * in_g],
                        w[g * out_g:(g + 1) * out_g, :, 0, 0].T,
                        precision=jax.lax.Precision.HIGHEST)
                for g in range(groups)]
        return jnp.concatenate(outs, axis=1) + b

    h = jnp.maximum(grouped_fc(gap, fc1_w, fc1_b, cardinality), 0.0)
    logits = grouped_fc(h, fc2_w, fc2_b, cardinality)
    B = x.shape[0]
    if radix > 1:
        a = logits.reshape(B, cardinality, radix, -1).transpose(0, 2, 1, 3)
        a = jax.nn.softmax(a, axis=1).reshape(B, -1)
        out = sum(a[:, r * channels:(r + 1) * channels][:, :, None, None]
                  * splits[r] for r in range(radix))
    else:
        a = jax.nn.sigmoid(logits)
        out = a[:, :, None, None] * y
    return out


if __name__ == "__main__":
    key = jax.random.PRNGKey(0)
    B, Cin, H, W = 2, 4, 16, 16
    channels, kernel_size, padding = 8, 3, 1
    radix, cardinality, reduction_factor = 2, 1, 4
    inter = max(Cin * radix // reduction_factor, 32)   # = 32
    G = cardinality * radix
    Cout = channels * radix

    ks = jax.random.split(key, 7)
    x = jax.random.normal(ks[0], (B, Cin, H, W), jnp.float32)
    conv_w = 0.1 * jax.random.normal(
        ks[1], (Cout, Cin // G, kernel_size, kernel_size), jnp.float32)
    conv_b = 0.1 * jax.random.normal(ks[2], (Cout,), jnp.float32)
    fc1_w = 0.1 * jax.random.normal(
        ks[3], (inter, channels // cardinality, 1, 1), jnp.float32)
    fc1_b = 0.1 * jax.random.normal(ks[4], (inter,), jnp.float32)
    fc2_w = 0.1 * jax.random.normal(
        ks[5], (Cout, inter // cardinality, 1, 1), jnp.float32)
    fc2_b = 0.1 * jax.random.normal(ks[6], (Cout,), jnp.float32)

    ref = ref_forward(x, conv_w, conv_b, fc1_w, fc1_b, fc2_w, fc2_b,
                      radix=radix, cardinality=cardinality,
                      channels=channels, padding=padding)

    # strict semantic check: f32 MXU operands and f32 y storage
    out_f32 = splat_conv2d(x, conv_w, conv_b, fc1_w, fc1_b, fc2_w, fc2_b,
                           radix=radix, cardinality=cardinality,
                           channels=channels, padding=padding,
                           kernel_size=kernel_size, mxu_dtype=jnp.float32)
    out_f32 = jax.block_until_ready(out_f32)
    assert out_f32.shape == (B, channels, H, W)
    err32 = float(jnp.max(jnp.abs(out_f32 - ref)))
    assert jnp.allclose(out_f32, ref, atol=1e-3, rtol=1e-3), err32

    # performance path: bf16 MXU operands + bf16 y (f32 accumulate/elementwise)
    out_bf16 = splat_conv2d(x, conv_w, conv_b, fc1_w, fc1_b, fc2_w, fc2_b,
                            radix=radix, cardinality=cardinality,
                            channels=channels, padding=padding,
                            kernel_size=kernel_size, mxu_dtype=jnp.bfloat16)
    out_bf16 = jax.block_until_ready(out_bf16)
    err16 = float(jnp.max(jnp.abs(out_bf16 - ref)))
    assert jnp.allclose(out_bf16, ref, atol=2e-2, rtol=2e-2), err16

    print("KERNEL_OK")
</pallas_src>

<mosaic_0001>
module attributes {stable_mosaic.version = 11 : i64} {
  func.func @_conv_gap_kernel(%arg0: i32, %arg1: i32, %arg2: memref<1x2x18x128xf32, #tpu.memory_space<vmem>>, %arg3: memref<2x8x18xf32, #tpu.memory_space<vmem>>, %arg4: memref<16x1xf32, #tpu.memory_space<vmem>>, %arg5: memref<1x16x128xf32, #tpu.memory_space<vmem>>, %arg6: memref<1x8x1xf32, #tpu.memory_space<vmem>>) attributes {dimension_semantics = [#tpu.dimension_semantics<parallel>, #tpu.dimension_semantics<arbitrary>], iteration_bounds = array<i64: 2, 2>, scalar_prefetch = 0 : i64, scratch_operands = 0 : i64, tpu.core_type = #tpu.core_type<tc>, window_params = [{transform_indices = @transform_0, window_bounds = array<i64: 1, 2, 18, 128>}, {pipeline_mode = #tpu.pipeline_mode<synchronous>, transform_indices = @transform_1, window_bounds = array<i64: 2, 8, 18>}, {pipeline_mode = #tpu.pipeline_mode<synchronous>, transform_indices = @transform_2, window_bounds = array<i64: 16, 1>}, {transform_indices = @transform_3, window_bounds = array<i64: 1, 16, 128>}, {transform_indices = @transform_4, window_bounds = array<i64: 1, 8, 1>}]} {
    %c0 = arith.constant 0 : index
    %c0_0 = arith.constant 0 : index
    %c0_1 = arith.constant 0 : index
    %0 = vector.load %arg3[%c0, %c0_0, %c0_1] : memref<2x8x18xf32, #tpu.memory_space<vmem>>, vector<1x8x18xf32>
    %1 = vector.shape_cast %0 : vector<1x8x18xf32> to vector<8x18xf32>
    %c0_2 = arith.constant 0 : index
    %c0_3 = arith.constant 0 : index
    %c0_4 = arith.constant 0 : index
    %c0_5 = arith.constant 0 : index
    %2 = vector.load %arg2[%c0_2, %c0_3, %c0_4, %c0_5] : memref<1x2x18x128xf32, #tpu.memory_space<vmem>>, vector<1x1x18x128xf32>
    %3 = vector.shape_cast %2 : vector<1x1x18x128xf32> to vector<18x128xf32>
    %cst = arith.constant dense<0.000000e+00> : vector<8x128xf32>
    %4 = tpu.matmul %1, %3, %cst {dimension_numbers = #tpu.dot_dimension_numbers<[1], [0], [0], [1], [0, 0, 1, 1], [], []>} : vector<8x18xf32>, vector<18x128xf32>, vector<8x128xf32> -> vector<8x128xf32>
    %c1 = arith.constant 1 : index
    %c0_6 = arith.constant 0 : index
    %c0_7 = arith.constant 0 : index
    %5 = vector.load %arg3[%c1, %c0_6, %c0_7] : memref<2x8x18xf32, #tpu.memory_space<vmem>>, vector<1x8x18xf32>
    %6 = vector.shape_cast %5 : vector<1x8x18xf32> to vector<8x18xf32>
    %c0_8 = arith.constant 0 : index
    %c1_9 = arith.constant 1 : index
    %c0_10 = arith.constant 0 : index
    %c0_11 = arith.constant 0 : index
    %7 = vector.load %arg2[%c0_8, %c1_9, %c0_10, %c0_11] : memref<1x2x18x128xf32, #tpu.memory_space<vmem>>, vector<1x1x18x128xf32>
    %8 = vector.shape_cast %7 : vector<1x1x18x128xf32> to vector<18x128xf32>
    %cst_12 = arith.constant dense<0.000000e+00> : vector<8x128xf32>
    %9 = tpu.matmul %6, %8, %cst_12 {dimension_numbers = #tpu.dot_dimension_numbers<[1], [0], [0], [1], [0, 0, 1, 1], [], []>} : vector<8x18xf32>, vector<18x128xf32>, vector<8x128xf32> -> vector<8x128xf32>
    %10 = tpu.concatenate %4, %9 in 0 : vector<8x128xf32>, vector<8x128xf32> -> vector<16x128xf32>
    %c0_13 = arith.constant 0 : index
    %c0_14 = arith.constant 0 : index
    %11 = vector.load %arg4[%c0_13, %c0_14] : memref<16x1xf32, #tpu.memory_space<vmem>>, vector<16x1xf32>
    %12 = vector.broadcast %11 : vector<16x1xf32> to vector<16x128xf32>
    %13 = arith.addf %10, %12 : vector<16x128xf32>
    %cst_15 = arith.constant 0.000000e+00 : f32
    %14 = vector.broadcast %cst_15 : f32 to vector<16x128xf32>
    %15 = arith.maximumf %13, %14 : vector<16x128xf32>
    %c0_16 = arith.constant 0 : index
    %c0_17 = arith.constant 0 : index
    %c0_18 = arith.constant 0 : index
    %16 = vector.load %arg5[%c0_16, %c0_17, %c0_18] : memref<1x16x128xf32, #tpu.memory_space<vmem>>, vector<1x16x128xf32>
    %17 = vector.shape_cast %16 : vector<1x16x128xf32> to vector<16x128xf32>
    %18 = vector.shape_cast %15 : vector<16x128xf32> to vector<1x16x128xf32>
    tpu.vector_store %arg5[%c0_16, %c0_17, %c0_18], %18 {strides = array<i32>} : memref<1x16x128xf32, #tpu.memory_space<vmem>>, vector<1x16x128xf32>,
    %19 = vector.extract_strided_slice %15 {offsets = [0, 0], sizes = [8, 128], strides = [1, 1]} : vector<16x128xf32> to vector<8x128xf32>
    %20 = vector.extract_strided_slice %15 {offsets = [8, 0], sizes = [8, 128], strides = [1, 1]} : vector<16x128xf32> to vector<8x128xf32>
    %21 = arith.addf %19, %20 : vector<8x128xf32>
    %c0_i32 = arith.constant 0 : i32
    %22 = arith.cmpi eq, %arg1, %c0_i32 : i32
    %23 = arith.extui %22 : i1 to i32
    %c0_i32_19 = arith.constant 0 : i32
    %24 = arith.cmpi ne, %23, %c0_i32_19 : i32
    scf.if %24 {
      %cst_28 = arith.constant 0.000000e+00 : f32
      %33 = vector.broadcast %cst_28 : f32 to vector<1x8x1xf32>
      %c0_29 = arith.constant 0 : index
      %c0_30 = arith.constant 0 : index
      %c0_31 = arith.constant 0 : index
      %34 = vector.load %arg6[%c0_29, %c0_30, %c0_31] : memref<1x8x1xf32, #tpu.memory_space<vmem>>, vector<1x8x1xf32>
      tpu.vector_store %arg6[%c0_29, %c0_30, %c0_31], %33 {strides = array<i32>} : memref<1x8x1xf32, #tpu.memory_space<vmem>>, vector<1x8x1xf32>,
    } else {
    }
    %c0_20 = arith.constant 0 : index
    %c0_21 = arith.constant 0 : index
    %c0_22 = arith.constant 0 : index
    %25 = vector.load %arg6[%c0_20, %c0_21, %c0_22] : memref<1x8x1xf32, #tpu.memory_space<vmem>>, vector<1x8x1xf32>
    %cst_23 = arith.constant dense<0.000000e+00> : vector<8xf32>
    %26 = vector.multi_reduction <add>, %21, %cst_23 [1] : vector<8x128xf32> to vector<8xf32>
    %27 = vector.shape_cast %26 : vector<8xf32> to vector<8x1xf32>
    %cst_24 = arith.constant 3.906250e-03 : f32
    %28 = vector.broadcast %cst_24 : f32 to vector<8x1xf32>
    %29 = arith.mulf %27, %28 : vector<8x1xf32>
    %30 = vector.shape_cast %29 : vector<8x1xf32> to vector<1x8x1xf32>
    %31 = arith.addf %25, %30 : vector<1x8x1xf32>
    %c0_25 = arith.constant 0 : index
    %c0_26 = arith.constant 0 : index
    %c0_27 = arith.constant 0 : index
    %32 = vector.load %arg6[%c0_25, %c0_26, %c0_27] : memref<1x8x1xf32, #tpu.memory_space<vmem>>, vector<1x8x1xf32>
    tpu.vector_store %arg6[%c0_25, %c0_26, %c0_27], %31 {strides = array<i32>} : memref<1x8x1xf32, #tpu.memory_space<vmem>>, vector<1x8x1xf32>,
    return
  }
  func.func @transform_0(%arg0: i32, %arg1: i32) -> (i32, i32, i32, i32) {
    %c0_i32 = arith.constant 0 : i32
    %c0_i32_0 = arith.constant 0 : i32
    %c0_i32_1 = arith.constant 0 : i32
    return %arg0, %c0_i32, %c0_i32_0, %arg1 : i32, i32, i32, i32
  }
  func.func @transform_1(%arg0: i32, %arg1: i32) -> (i32, i32, i32) {
    %c0_i32 = arith.constant 0 : i32
    %c0_i32_0 = arith.constant 0 : i32
    %c0_i32_1 = arith.constant 0 : i32
    %c0_i32_2 = arith.constant 0 : i32
    return %c0_i32, %c0_i32_0, %c0_i32_1 : i32, i32, i32
  }
  func.func @transform_2(%arg0: i32, %arg1: i32) -> (i32, i32) {
    %c0_i32 = arith.constant 0 : i32
    %c0_i32_0 = arith.constant 0 : i32
    %c0_i32_1 = arith.constant 0 : i32
    return %c0_i32, %c0_i32_0 : i32, i32
  }
  func.func @transform_3(%arg0: i32, %arg1: i32) -> (i32, i32, i32) {
    %c0_i32 = arith.constant 0 : i32
    %c0_i32_0 = arith.constant 0 : i32
    return %arg0, %c0_i32, %arg1 : i32, i32, i32
  }
  func.func @transform_4(%arg0: i32, %arg1: i32) -> (i32, i32, i32) {
    %c0_i32 = arith.constant 0 : i32
    %c0_i32_0 = arith.constant 0 : i32
    %c0_i32_1 = arith.constant 0 : i32
    return %arg0, %c0_i32, %c0_i32_0 : i32, i32, i32
  }
}

</mosaic_0001>

<bundles_post_ra>
// kernel: tpu_custom_call.1
= control target key start
LH: loop header
LB: loop body
LE: loop exit
PB: predicated region body
PF: predicated region fallthrough
CT: control target
= control target key end

     0   :  { %s892_s0 = inlined_call_operand.vmem [shape: f32[2,2,18,256], index: 0, kind: input, shape index: {}]   ;;  %s893_s1 = inlined_call_operand.vmem [shape: f32[2,8,18], index: 1, kind: input, shape index: {}]   ;;  %s894_s2 = inlined_call_operand.vmem [shape: f32[16,1], index: 2, kind: input, shape index: {}]   ;;  %s895_s3 = inlined_call_operand.hbm [shape: f32[2,16,256], index: 3, kind: output, shape index: {0}]   ;;  %s896_s4 = inlined_call_operand.vmem [shape: f32[2,8,1], index: 4, kind: output, shape index: {1}]  }
   0x1   :  { %897 = sst [smem:[#allocation6_spill]] %s892_s0 }
   0x2   :  { %898 = sst [smem:[#allocation7_spill]] %s893_s1 }
   0x3   :  { %10 = vsyncpa [#allocation4], 0 }
   0x4   :  { %12 = vsyncpa [#allocation4 + $0x1], 0  ;;  %s735_s15 = smov 0   ;;  %s737_s16 = smov 0  }
   0x5   :  { %s739_s17 = smov 0   ;;  %s741_s18 = smov 0  }
   0x6   :  { %s743_s19 = smov 0   ;;  %s745_s20 = smov 0  }
   0x7   :  { %s747_s21 = smov 0   ;;  %s749_s22 = smov 0  }
   0x8 LB: > { %s507_s23 = sadd.s32 4294967295, %s703_s22   ;;  %s508_s24 = sadd.s32 4294967294, %s703_s22   ;;  %s703_s22 = sphi %s749_s22, %s18_s22   ;;  %s699_s21 = sphi %s747_s21, %s910_s21   ;;  %s695_s20 = sphi %s745_s20, %s909_s20   ;;  %s691_s19 = sphi %s743_s19, %s908_s19   ;;  %s687_s18 = sphi %s741_s18, %s907_s18   ;;  %s683_s17 = sphi %s739_s17, %s906_s17   ;;  %s679_s16 = sphi %s737_s16, %s905_s16   ;;  %s675_s15 = sphi %s735_s15, %s904_s15  }
   0x9   : > { %s27_s25 = sadd.s32 1, %s695_s20  ;;  %s30_s26 = sadd.s32 1, %s699_s21 }
   0xa   : > { %p28_p0 = scmp.ge.s32.totalorder %s27_s25, 2  ;;  %p46_p1 = scmp.ne.s32.totalorder %s683_s17, %s679_s16 }
   0xb   : > { %p47_p2 = scmp.eq.s32.totalorder %s703_s22, 0  ;;  %p120_p5 = scmp.eq.s32.totalorder %s507_s23, 3 }
   0xc   : > { %s912_s25 = smov (%p28_p0, %s27_s25), 0  ;;  %s914_s26 = smov (!%p28_p0, %s30_s26), %s699_s21 }
   0xd   : > { %s35_s27 = ssub.s32 %s695_s20, %s912_s25  ;;  %p787_p3 = por %p47_p2, %p46_p1 }
   0xe   : > { %p32_p4 = scmp.ge.s32.totalorder %s914_s26, 2  ;;  %p125_p6 = scmp.ne.s32.totalorder %s679_s16, %s675_s15 }
   0xf   : > { %p126_p7 = scmp.eq.s32.totalorder %s508_s24, 3  ;;  %p795_p8 = por %p120_p5, %p46_p1 }
  0x10   : > { %s916_s26 = smov (%p32_p4, %s914_s26), 0  ;;  %s39_s7 = sadd.s32 1, %s683_s17 }
  0x11   : > { %p799_p9 = por %p126_p7, %p125_p6  ;;  %s34_s5 = ssub.s32 %s699_s21, %s916_s26 }
  0x12   : > { %s36_s6 = sor.u32 %s35_s27, %s34_s5  ;;  %p510_p11 = scmp.ge.s32.totalorder %s703_s22, 4 }
  0x13   : > { %p37_p10 = scmp.eq.s32.totalorder %s36_s6, 0 }
  0x14   : > { %174 = sbr.rel (%p510_p11) target bundleno = 40 (0x28), region = 24 }
  0x15   : > { %s807_s8 = scalar_select %p37_p10, %s683_s17, %s39_s7  }
  0x19   : > { %177 = sbr.rel (!%p787_p3) target bundleno = 40 (0x28), region = 28  ;;  %s179_s9 = sand.u32 (%p787_p3), 1, %s683_s17  }
  0x1a   : > { %s530_s10 = smul.u32 (%p787_p3), 12, %s699_s21  ;;  %s902_s0 = sld [smem:[#allocation6_spill]] (%p787_p3) }
  0x1b   : > { %s529_s11 = smul.u32 (%p787_p3), 48, %s179_s9 }
  0x1c   : > { %s183_s12 = sadd.s32 (%p787_p3), %s695_s20, %s530_s10 }
  0x1d   : > { %s511_s13 = sshll.u32 (%p787_p3), %s183_s12, 3  ;;  %s181_s27 = scalar_lea.vmem (%p787_p3), [#allocation2], %s529_s11 }
  0x20   : > { %s185_s24 = scalar_lea.vmem %s902_s0, %s511_s13 }
  0x21   : > { %v224_v0 = vld [vmem:[%s185_s24] sm:$0xff]  ;;  %v226_v1 = vld [vmem:[%s185_s24 + $0x10] sm:$0xff] }
  0x22   : > { %v228_v2 = vld [vmem:[%s185_s24 + $0x20] sm:$0xff]  ;;  %225 = vst [vmem:[%s181_s27] sm:$0xff] %v224_v0  ;;  %v230_v3 = vld [vmem:[%s185_s24 + $0x30] sm:$0xff] }
  0x23   : > { %227 = vst [vmem:[%s181_s27 + $0x8] sm:$0xff] %v226_v1  ;;  %v232_v4 = vld [vmem:[%s185_s24 + $0x40] sm:$0xff]  ;;  %v234_v5 = vld [vmem:[%s185_s24 + $0x50] sm:$0xff] }
  0x24   : > { %229 = vst [vmem:[%s181_s27 + $0x10] sm:$0xff] %v228_v2 }
  0x25   : > { %231 = vst [vmem:[%s181_s27 + $0x18] sm:$0xff] %v230_v3 }
  0x26   : > { %233 = vst [vmem:[%s181_s27 + $0x20] sm:$0xff] %v232_v4 }
  0x27   : > { %235 = vst [vmem:[%s181_s27 + $0x28] sm:$0xff] %v234_v5 }
  0x28 PF: > { %p512_p12 = scmp.ge.s32.totalorder %s703_s22, 1  ;;  %p240_p13 = scmp.lt.s32.totalorder %s703_s22, 5 }
  0x2a   : > { %p241_p0 = pnand %p512_p12, %p240_p13 }
  0x2b   : > { %s824_s6 = sand.u32 (!%p241_p0), 1, %s679_s16   ;;  %p276_p1 = scmp.lt.s32.totalorder (!%p241_p0), %s691_s19, 1 }
  0x2c   : > { %244 = sbr.rel (%p241_p0) target bundleno = 310 (0x136), region = 66  ;;  %s903_s1 = sld [smem:[#allocation7_spill]] (!%p241_p0) }
  0x2d   : > { %s531_s7 = smul.u32 (!%p241_p0), 48, %s824_s6  ;;  %p523_p2 = scmp.ne.s32.totalorder (!%p241_p0), %s687_s18, 0 }
  0x2f   : > { %s249_s11 = scalar_lea.vmem (!%p241_p0), [#allocation2], %s531_s7 }
  0x31   : > { %v344_v6 = vld [vmem:[%s894_s2] sm:$0xff]  ;;  %v705_v7 = vmov 0   ;;  %s277_s9 = scalar_select %p276_p1, %s691_s19, 1  ;;  %vm288_vm0 = vcmask 1041408   ;;  %v520_v9 = vld [vmem:[%s249_s11 + $0x28] sm:$0x3] }
  0x32   : > { %608 = vset.pattern.permute.xlu0 %v705_v7  ;;  %v283_v8 = vld [vmem:[%s249_s11 + $0x10] sm:$0x3]  ;;  %v282_v10 = vld [vmem:[%s249_s11 + $0x8] sm:$0xff]  ;;  %521 = vmatpush.msk.msra.mxu1 %vm288_vm0, %v520_v9  ;;  %v519_v11 = vld [vmem:[%s249_s11 + $0x20] sm:$0xff]  ;;  %vm284_vm1 = vcmask 146432  }
  0x33   : > { %348 = vperm.xlu0 %608, %v344_v6   ;;  %s514_s10 = sshll.u32 %s277_s9, 3  ;;  %515 = vmatpush.msk.msra.mxu0 %vm288_vm0, %v283_v8  ;;  %v281_v12 = vld [vmem:[%s249_s11] sm:$0xff]  ;;  %v518_v13 = vld [vmem:[%s249_s11 + $0x18] sm:$0xff]  ;;  %s513_s9 = sshll.u32 %s824_s6, 4 }
  0x34   : > { %s832_s14 = scalar_lea.vmem %s896_s4, %s514_s10  ;;  %338 = vmatpush.msra.mxu1 %v519_v11  ;;  %v280_v14 = vld [vmem:[%s903_s1] sm:$0xff]  ;;  %v517_v15 = vld [vmem:[%s903_s1 + $0x8] sm:$0xff]  ;;  %s269_s10 = scalar_lea.vmem [#allocation3], %s513_s9 }
  0x35   : > { %306 = vmatpush.msra.mxu0 %v282_v10  ;;  %v345_v16 = vld [vmem:[%s894_s2 + $0x8] sm:$0xff] }
  0x36   : > { %339 = vmatpush.msra.mxu1 %v518_v13 }
  0x37   : > { %307 = vmatpush.msra.mxu0 %v281_v12  ;;  %522 = vmatmul.msk.f32.vlgmr.msra.gmra.mxu1 %vm284_vm1, %v517_v15 }
  0x38   : > { %516 = vmatmul.msk.f32.vlgmr.msra.gmra.mxu0 %vm284_vm1, %v280_v14 }
  0x3b   : > { %353 = vperm.xlu0 %608, %v345_v16  }
  0xa5   : > { %v349_v17 = vpop.permute.xlu0 %348 }
  0xad   : > { %v354_v18 = vpop.permute.xlu0 %353 }
  0xb4   : > { %v341_v20 = vpop.f32.mrf.mxu1 }
  0xb5   : > { %v309_v19 = vpop.f32.mrf.mxu0  ;;  %v357_v22 = vadd.f32 %v354_v18, %v341_v20 }
  0xb6   : > { %v356_v21 = vadd.f32 %v349_v17, %v309_v19  ;;  %366 = sbr.rel (%p523_p2) target bundleno = 189 (0xbd), region = 74 }
  0xb7   : > { %v359_v24 = vmax.f32 %v357_v22, 0.0 }
  0xb8   : > { %v358_v23 = vmax.f32 %v356_v21, 0.0 }
  0xb9   : > { %361 = vst [vmem:[%s269_s10 + $0x8] sm:$0xff] %v359_v24 }
  0xba   : > { %360 = vst [vmem:[%s269_s10] sm:$0xff] %v358_v23  ;;  %v362_v25 = vadd.f32 %v359_v24, %v358_v23 }
  0xbb   : > { %vm367_vm2 = vcmask 7168   ;;  %v706_v26 = vmov 0.0  }
  0xbc   : > { %368 = vst.msk [vmem:[%s832_s14] sm:$0xff] %vm367_vm2, %v706_v26 }
  0xbd PF: > { %370 = vadd.xlane.f32.xlu0 %v362_v25  ;;  %s525_s11 = sshll.u32 %s691_s19, 2  ;;  %s394_s13 = sshll.u32 %s269_s10, 4  ;;  %s395_s13 = int_to_ptr.vmem [resolvable:$true] %s394_s13 }
  0xbe   : > { %s391_s12 = sadd.s32 %s687_s18, %s525_s11  ;;  %s377_s7 = scalar_lea.sflag [#allocation4], %s824_s6 }
  0xbf   : > { %s526_s23 = sshll.u32 %s391_s12, 3  ;;  %s629_s18 = scalar_lea.hbm %s895_s3, 64 }
  0xc0   : > { %s393_s28 = scalar_lea.hbm %s895_s3, %s526_s23 }
  0xc1   : > { %s396_s5 = sshll.u32 %s393_s28, 4  ;;  %s397_s5 = int_to_ptr.hbm [resolvable:$true] %s396_s5 }
  0xc2   : > { %s623_s9 = sshra.s32 %s397_s5, 4  ;;  %s624_s9 = int_to_ptr.hbm [resolvable:$true] %s623_s9 }
  0xc3   : > { %s625_s0 = scalar_lea.hbm %s624_s9, 16  ;;  %p630_p6 = scmp.lt.s32.totalorder %s624_s9, %s895_s3 }
  0xc4   : > { %p626_p3 = scmp.ne.s32.totalorder %s624_s9, %s625_s0  ;;  %p631_p7 = scmp.lt.s32.totalorder %s629_s18, %s625_s0 }
  0xc6   : > { %p627_p4 = pnand %p626_p3, %p795_p8  ;;  %p632_p10 = por %p631_p7, %p630_p6 }
  0xc8   : > { %p628_p5 = pneg %p627_p4 }
  0xca   : > { %p633_p11 = pnand %p632_p10, %p628_p5 }
  0xcc   : > { %636 = shalt.err (!%p633_p11)
}
  0xcd   : > { %s707_s6 = smov 128   ;;  %s708_s12 = smov 256   ;;  %v369_v27 = vld [vmem:[%s832_s14] sm:$0xff]  ;;  %vm374_vm3 = vcmask 7168  }
  0xce   : > { %s709_s23 = smov 8  }
  0xcf   : > { %532 = dma.vmem_to_hbm [thread:$0]  (%p795_p8), %s395_s13, 256, %s397_s5, %s377_s7, %s707_s6, %s708_s12, %s709_s23  }
 0x130   : > { %v371_v28 = vpop.xlane.xlu0 %370 }
 0x131   : > { %v372_v29 = vmul.f32 0.00390625, %v371_v28 }
 0x133   : > { %v373_v30 = vadd.f32 %v372_v29, %v369_v27 }
 0x135   : > { %375 = vst.msk [vmem:[%s832_s14] sm:$0xff] %vm374_vm3, %v373_v30 }
 0x136 PF: > { %p538_p12 = scmp.ge.s32.totalorder %s703_s22, 2  ;;  %s414_s0 = sand.u32 1, %s675_s15  }
 0x137   : > { %s415_s1 = scalar_lea.sflag [#allocation4], %s414_s0 }
 0x138   : > { %p535_p13 = pnand %p538_p12, %p799_p9 }
 0x13a   : > { %p536_p0 = pneg %p535_p13 }
 0x13c   : > { %670 = dma.done.wait (%p536_p0), %s415_s1, 256  }
 0x13d   : > { %672 = vsyncadd (%p536_p0), %s415_s1, 4294967040  ;;  %s18_s22 = sadd.s32 1, %s703_s22   ;;  %s904_s15 = smov %s679_s16 }
 0x13e   : > { %p15_p8 = scmp.ge.s32.totalorder %s18_s22, 6   ;;  %s905_s16 = smov %s683_s17 }
 0x13f   : > { %s906_s17 = smov %s807_s8  ;;  %s907_s18 = smov %s695_s20 }
 0x140   : > { %s908_s19 = smov %s699_s21  ;;  %s909_s20 = smov %s912_s25 }
 0x141   : > { %s910_s21 = smov %s916_s26  ;;  %17 = sbr.rel (!%p15_p8) target bundleno = 8 (0x8), region = 128 }
 0x146   :  { %428 = vsyncpa [#allocation4], 1 }
 0x147   :  { %430 = vsyncpa [#allocation4 + $0x1], 1 }

</bundles_post_ra>
